<compile_context>
chip_gen: v7x
topology: tpu7x:2x2x1
jax: 0.10.0
libtpu: 0.0.40
codegen_flags: <defaults>
</compile_context>

<pallas_src>
import functools

import jax
import jax.numpy as jnp
from jax import lax
from jax.experimental import pallas as pl

# ---- small, forward-consistent sizes -------------------------------------
VOCAB = 64
VOCAB_PAD = 128        # lane-dense padded logits width (sliced back to VOCAB)
D_MODEL = 32           # d_model
MAX_SEQ = 64           # max_seq_len
TONE_VOCAB = 16        # tone_vocab_size
NUM_STYLE = 8
BATCH = 2
SEQ = 8

# parameter-slab row layout (rows 64:72 hold the vector params)
SLAB_ROWS = 72
_ROW_POLW0 = 0                  # rows  0:32, cols 0:32  -> polisher weight
_ROW_OUTW0 = 32                 # rows 32:64, cols 0:128 -> output weight (padded)
_ROW_VEC0 = 64                  # rows 64:72 -> vector params
(_V_LN_G, _V_LN_B, _V_POL_B, _V_PLN_G, _V_PLN_B, _V_OUT_B) = range(6)


# ---- fused Pallas kernel: embeddings -> ln_final -> polisher -> proj -------
def fused_forward_kernel(ids_ref, table_ref, slab_ref, out_ref, *, seq_len):
    eps = 1e-5
    f32 = jnp.float32
    n = ids_ref.shape[0]
    T = table_ref.shape[0]                 # 64 + seq_len + 16 (sublane aligned)
    d = D_MODEL
    pos_off = VOCAB
    tone_off = VOCAB + seq_len

    # --- unpack ids (single int32 operand: lane 0 = token, lane 1 = tone) ---
    ids = ids_ref[...]                     # (n, 8) int32
    tok = ids[:, 0:1]                      # (n, 1)
    tone = ids[:, 1:2]                     # (n, 1)

    # --- unpack parameter slab (single f32 operand) --------------------------
    slab = slab_ref[...]                                  # (72, 128)
    pol_w = slab[_ROW_POLW0:_ROW_POLW0 + d, :d]           # (32, 32)
    out_w = slab[_ROW_OUTW0:_ROW_OUTW0 + d, :]            # (32, 128)
    vp = slab[_ROW_VEC0:_ROW_VEC0 + 8, :]                 # (8, 128)
    ln_g = vp[_V_LN_G:_V_LN_G + 1, :d]
    ln_b = vp[_V_LN_B:_V_LN_B + 1, :d]
    pol_b = vp[_V_POL_B:_V_POL_B + 1, :d]
    pln_g = vp[_V_PLN_G:_V_PLN_G + 1, :d]
    pln_b = vp[_V_PLN_B:_V_PLN_B + 1, :d]
    out_b = vp[_V_OUT_B:_V_OUT_B + 1, :]                  # (1, 128)

    # --- single multi-hot gather matmul (token + position + tone) -----------
    lane = lax.broadcasted_iota(jnp.int32, (n, T), 1)
    row = lax.broadcasted_iota(jnp.int32, (n, T), 0)
    pos = row % seq_len                                   # rows are (B, S)-flat
    hot = ((lane == tok) |
           (lane == (pos_off + pos)) |
           (lane == (tone_off + tone))).astype(f32)       # disjoint index ranges

    # hidden = tok_emb + pos_emb + 0.1*(tone_mixer) ; style_id=None -> style==0
    # (0.1 scale and tone_mixer bias already folded into the tone table rows)
    x = jnp.dot(hot, table_ref[...], preferred_element_type=f32)   # (n, 32)

    # TODO(synk): UltraChronoFireBlock / neuromodulation are not defined in the
    # reference source, so the per-timestep layer stack is identity, there is
    # no emotion boost, and should_silent == 0 (leaves logits unchanged).

    # --- ln_final (moment-form variance, clamped, eps=1e-5) ------------------
    mu = jnp.mean(x, axis=-1, keepdims=True)
    ex2 = jnp.mean(x * x, axis=-1, keepdims=True)
    var = jnp.maximum(ex2 - mu * mu, 0.0)
    xn = (x - mu) * lax.rsqrt(var + eps) * ln_g + ln_b

    # --- response_polisher: Linear -> SiLU -> LayerNorm (Dropout = identity) -
    y = jnp.dot(xn, pol_w, preferred_element_type=f32) + pol_b
    y = y * jax.nn.sigmoid(y)                             # SiLU (EUP slot)
    mu2 = jnp.mean(y, axis=-1, keepdims=True)
    ey2 = jnp.mean(y * y, axis=-1, keepdims=True)
    var2 = jnp.maximum(ey2 - mu2 * mu2, 0.0)
    yn = (y - mu2) * lax.rsqrt(var2 + eps) * pln_g + pln_b

    # --- output_proj into a lane-dense 128-wide padded block -----------------
    out_ref[...] = jnp.dot(yn, out_w, preferred_element_type=f32) + out_b


def pallas_forward(kp, ids, seq_len):
    """All operands live whole in VMEM; one invocation, no grid, no pipelining."""
    n = ids.shape[0]
    kernel = functools.partial(fused_forward_kernel, seq_len=seq_len)
    return pl.pallas_call(
        kernel,
        out_shape=jax.ShapeDtypeStruct((n, VOCAB_PAD), jnp.float32),
    )(ids, kp["emb_table"], kp["param_slab"])


# ---- deterministic parameter init (synthetic, shapes from __init__) --------
def init_params(key):
    ks = jax.random.split(key, 10)
    n = lambda k, shape, s=0.02: (s * jax.random.normal(k, shape)).astype(jnp.float32)
    return {
        "token_embedding": n(ks[0], (VOCAB, D_MODEL)),
        "pos_embedding":   n(ks[1], (MAX_SEQ, D_MODEL)),
        "tone_embedding":  n(ks[2], (TONE_VOCAB, D_MODEL // 8)),
        "tone_mixer_w":    n(ks[3], (D_MODEL // 8, D_MODEL)),
        "tone_mixer_b":    jnp.zeros((D_MODEL,), jnp.float32),
        # style path kept for parity; unused when style_id is None.
        "style_embedding": n(ks[4], (NUM_STYLE, D_MODEL // 4)),
        "style_proj_w":    n(ks[5], (D_MODEL // 4, D_MODEL)),
        "style_proj_b":    jnp.zeros((D_MODEL,), jnp.float32),
        "ln_final_g":      jnp.ones((D_MODEL,), jnp.float32),
        "ln_final_b":      jnp.zeros((D_MODEL,), jnp.float32),
        "polisher_w":      n(ks[6], (D_MODEL, D_MODEL)),
        "polisher_b":      jnp.zeros((D_MODEL,), jnp.float32),
        "polisher_ln_g":   jnp.ones((D_MODEL,), jnp.float32),
        "polisher_ln_b":   jnp.zeros((D_MODEL,), jnp.float32),
        "output_w":        n(ks[7], (D_MODEL, VOCAB)),
        "output_b":        jnp.zeros((VOCAB,), jnp.float32),
    }


def pack_for_kernel(params, seq_len):
    """One-time repack into 2 kernel operands (done outside the forward)."""
    d = D_MODEL
    # Merged embedding table: [token ; pos[:seq_len] ; 0.1*(tone E@W + b)].
    # Each output row selects exactly one tone row, so the 0.1*bias fold is exact.
    tone_rows = 0.1 * (params["tone_embedding"] @ params["tone_mixer_w"]
                       + params["tone_mixer_b"][None, :])
    table = jnp.concatenate(
        [params["token_embedding"],
         params["pos_embedding"][:seq_len],
         tone_rows], axis=0).astype(jnp.float32)          # (64+seq+16, d)
    rows = table.shape[0]
    rows_pad = ((rows + 7) // 8) * 8                      # sublane-align
    if rows_pad != rows:
        table = jnp.pad(table, ((0, rows_pad - rows), (0, 0)))

    # One (72, 128) parameter slab: polisher_w, padded output_w, vector params.
    slab = jnp.zeros((SLAB_ROWS, VOCAB_PAD), jnp.float32)
    slab = slab.at[_ROW_POLW0:_ROW_POLW0 + d, :d].set(params["polisher_w"])
    slab = slab.at[_ROW_OUTW0:_ROW_OUTW0 + d, :VOCAB].set(params["output_w"])
    slab = slab.at[_ROW_VEC0 + _V_LN_G, :d].set(params["ln_final_g"])
    slab = slab.at[_ROW_VEC0 + _V_LN_B, :d].set(params["ln_final_b"])
    slab = slab.at[_ROW_VEC0 + _V_POL_B, :d].set(params["polisher_b"])
    slab = slab.at[_ROW_VEC0 + _V_PLN_G, :d].set(params["polisher_ln_g"])
    slab = slab.at[_ROW_VEC0 + _V_PLN_B, :d].set(params["polisher_ln_b"])
    slab = slab.at[_ROW_VEC0 + _V_OUT_B, :VOCAB].set(params["output_b"])
    return {"emb_table": table, "param_slab": slab}


# ---- full forward (trivial int prep in JAX, everything else fused) ---------
@jax.jit
def forward(kp, tokens, tone_ids):
    B, S = tokens.shape
    n = B * S
    # Single packed int32 id operand: lane 0 = token id, lane 1 = tone id.
    # Positions are recomputed in-kernel (row % S), so no pos operand at all.
    ids = jnp.zeros((n, 8), jnp.int32)
    ids = ids.at[:, 0].set(tokens.reshape(n).astype(jnp.int32))
    ids = ids.at[:, 1].set(jnp.repeat(tone_ids.astype(jnp.int32), S))

    logits_pad = pallas_forward(kp, ids, seq_len=S)        # (n, 128)
    return logits_pad[:, :VOCAB].reshape(B, S, VOCAB)


if __name__ == "__main__":
    key = jax.random.PRNGKey(0)
    k_params, k_tok, k_tone = jax.random.split(key, 3)

    params = init_params(k_params)
    kparams = pack_for_kernel(params, seq_len=SEQ)
    tokens = jax.random.randint(k_tok, (BATCH, SEQ), 0, VOCAB, dtype=jnp.int32)
    tone_ids = jax.random.randint(k_tone, (BATCH,), 0, TONE_VOCAB, dtype=jnp.int32)

    logits = forward(kparams, tokens, tone_ids)
    jax.block_until_ready(logits)

    assert logits.shape == (BATCH, SEQ, VOCAB)
    assert logits.dtype == jnp.float32
    print("KERNEL_OK")
</pallas_src>

<mosaic_0001>
module attributes {stable_mosaic.version = 11 : i64} {
  func.func @fused_forward_kernel(%arg0: memref<16x8xi32, #tpu.memory_space<vmem>>, %arg1: memref<88x32xf32, #tpu.memory_space<vmem>>, %arg2: memref<72x128xf32, #tpu.memory_space<vmem>>, %arg3: memref<16x128xf32, #tpu.memory_space<vmem>>) attributes {dimension_semantics = [], scalar_prefetch = 0 : i64, scratch_operands = 0 : i64, tpu.core_type = #tpu.core_type<tc>} {
    %c0 = arith.constant 0 : index
    %c0_0 = arith.constant 0 : index
    %0 = vector.load %arg0[%c0, %c0_0] : memref<16x8xi32, #tpu.memory_space<vmem>>, vector<16x8xi32>
    %1 = vector.extract_strided_slice %0 {offsets = [0, 0], sizes = [16, 1], strides = [1, 1]} : vector<16x8xi32> to vector<16x1xi32>
    %2 = vector.extract_strided_slice %0 {offsets = [0, 1], sizes = [16, 1], strides = [1, 1]} : vector<16x8xi32> to vector<16x1xi32>
    %c0_1 = arith.constant 0 : index
    %c0_2 = arith.constant 0 : index
    %3 = vector.load %arg2[%c0_1, %c0_2] : memref<72x128xf32, #tpu.memory_space<vmem>>, vector<72x128xf32>
    %4 = vector.extract_strided_slice %3 {offsets = [0, 0], sizes = [32, 32], strides = [1, 1]} : vector<72x128xf32> to vector<32x32xf32>
    %5 = vector.extract_strided_slice %3 {offsets = [32, 0], sizes = [32, 128], strides = [1, 1]} : vector<72x128xf32> to vector<32x128xf32>
    %6 = vector.extract_strided_slice %3 {offsets = [64, 0], sizes = [8, 128], strides = [1, 1]} : vector<72x128xf32> to vector<8x128xf32>
    %7 = vector.extract_strided_slice %6 {offsets = [0, 0], sizes = [1, 32], strides = [1, 1]} : vector<8x128xf32> to vector<1x32xf32>
    %8 = vector.extract_strided_slice %6 {offsets = [1, 0], sizes = [1, 32], strides = [1, 1]} : vector<8x128xf32> to vector<1x32xf32>
    %9 = vector.extract_strided_slice %6 {offsets = [2, 0], sizes = [1, 32], strides = [1, 1]} : vector<8x128xf32> to vector<1x32xf32>
    %10 = vector.extract_strided_slice %6 {offsets = [3, 0], sizes = [1, 32], strides = [1, 1]} : vector<8x128xf32> to vector<1x32xf32>
    %11 = vector.extract_strided_slice %6 {offsets = [4, 0], sizes = [1, 32], strides = [1, 1]} : vector<8x128xf32> to vector<1x32xf32>
    %12 = vector.extract_strided_slice %6 {offsets = [5, 0], sizes = [1, 128], strides = [1, 1]} : vector<8x128xf32> to vector<1x128xf32>
    %13 = tpu.iota {dimensions = array<i32: 1>} : vector<16x88xi32>
    %14 = tpu.iota {dimensions = array<i32: 0>} : vector<16x88xi32>
    %c8_i32 = arith.constant 8 : i32
    %c0_i32 = arith.constant 0 : i32
    %15 = arith.cmpi eq, %c8_i32, %c0_i32 : i32
    %c1_i32 = arith.constant 1 : i32
    %16 = arith.select %15, %c1_i32, %c8_i32 : i32
    %17 = vector.broadcast %16 : i32 to vector<16x88xi32>
    %18 = arith.remsi %14, %17 : vector<16x88xi32>
    %c0_i32_3 = arith.constant 0 : i32
    %19 = vector.broadcast %c0_i32_3 : i32 to vector<16x88xi32>
    %20 = arith.cmpi ne, %18, %19 : vector<16x88xi32>
    %c0_i32_4 = arith.constant 0 : i32
    %21 = vector.broadcast %c0_i32_4 : i32 to vector<16x88xi32>
    %22 = arith.cmpi slt, %18, %21 : vector<16x88xi32>
    %c0_i32_5 = arith.constant 0 : i32
    %23 = arith.cmpi slt, %16, %c0_i32_5 : i32
    %24 = vector.broadcast %23 : i1 to vector<16x88xi1>
    %25 = vector.broadcast %24 : vector<16x88xi1> to vector<16x88xi1>
    %26 = arith.xori %22, %25 : vector<16x88xi1>
    %27 = arith.andi %26, %20 : vector<16x88xi1>
    %28 = vector.broadcast %16 : i32 to vector<16x88xi32>
    %29 = arith.addi %18, %28 : vector<16x88xi32>
    %30 = arith.select %27, %29, %18 : vector<16x88xi1>, vector<16x88xi32>
    %31 = vector.broadcast %1 : vector<16x1xi32> to vector<16x88xi32>
    %32 = arith.cmpi eq, %13, %31 : vector<16x88xi32>
    %c64_i32 = arith.constant 64 : i32
    %33 = vector.broadcast %c64_i32 : i32 to vector<16x88xi32>
    %34 = arith.addi %33, %30 : vector<16x88xi32>
    %35 = arith.cmpi eq, %13, %34 : vector<16x88xi32>
    %36 = arith.ori %32, %35 : vector<16x88xi1>
    %c72_i32 = arith.constant 72 : i32
    %37 = vector.broadcast %c72_i32 : i32 to vector<16x1xi32>
    %38 = arith.addi %37, %2 : vector<16x1xi32>
    %39 = vector.broadcast %38 : vector<16x1xi32> to vector<16x88xi32>
    %40 = arith.cmpi eq, %13, %39 : vector<16x88xi32>
    %41 = arith.ori %36, %40 : vector<16x88xi1>
    %42 = arith.extui %41 : vector<16x88xi1> to vector<16x88xi32>
    %43 = arith.sitofp %42 : vector<16x88xi32> to vector<16x88xf32>
    %c0_6 = arith.constant 0 : index
    %c0_7 = arith.constant 0 : index
    %44 = vector.load %arg1[%c0_6, %c0_7] : memref<88x32xf32, #tpu.memory_space<vmem>>, vector<88x32xf32>
    %cst = arith.constant dense<0.000000e+00> : vector<16x32xf32>
    %45 = tpu.matmul %43, %44, %cst {dimension_numbers = #tpu.dot_dimension_numbers<[1], [0], [0], [1], [0, 0, 1, 1], [], []>} : vector<16x88xf32>, vector<88x32xf32>, vector<16x32xf32> -> vector<16x32xf32>
    %cst_8 = arith.constant dense<0.000000e+00> : vector<16xf32>
    %46 = vector.multi_reduction <add>, %45, %cst_8 [1] : vector<16x32xf32> to vector<16xf32>
    %47 = vector.shape_cast %46 : vector<16xf32> to vector<16x1xf32>
    %cst_9 = arith.constant 3.200000e+01 : f32
    %48 = vector.broadcast %cst_9 : f32 to vector<16x1xf32>
    %49 = arith.divf %47, %48 : vector<16x1xf32>
    %50 = arith.mulf %45, %45 : vector<16x32xf32>
    %cst_10 = arith.constant dense<0.000000e+00> : vector<16xf32>
    %51 = vector.multi_reduction <add>, %50, %cst_10 [1] : vector<16x32xf32> to vector<16xf32>
    %52 = vector.shape_cast %51 : vector<16xf32> to vector<16x1xf32>
    %cst_11 = arith.constant 3.200000e+01 : f32
    %53 = vector.broadcast %cst_11 : f32 to vector<16x1xf32>
    %54 = arith.divf %52, %53 : vector<16x1xf32>
    %55 = arith.mulf %49, %49 : vector<16x1xf32>
    %56 = arith.subf %54, %55 : vector<16x1xf32>
    %cst_12 = arith.constant 0.000000e+00 : f32
    %57 = vector.broadcast %cst_12 : f32 to vector<16x1xf32>
    %58 = arith.maximumf %56, %57 : vector<16x1xf32>
    %59 = vector.broadcast %49 : vector<16x1xf32> to vector<16x32xf32>
    %60 = arith.subf %45, %59 : vector<16x32xf32>
    %cst_13 = arith.constant 9.99999974E-6 : f32
    %61 = vector.broadcast %cst_13 : f32 to vector<16x1xf32>
    %62 = arith.addf %58, %61 : vector<16x1xf32>
    %63 = math.rsqrt %62 : vector<16x1xf32>
    %64 = vector.broadcast %63 : vector<16x1xf32> to vector<16x32xf32>
    %65 = arith.mulf %60, %64 : vector<16x32xf32>
    %66 = vector.broadcast %7 : vector<1x32xf32> to vector<16x32xf32>
    %67 = arith.mulf %65, %66 : vector<16x32xf32>
    %68 = vector.broadcast %8 : vector<1x32xf32> to vector<16x32xf32>
    %69 = arith.addf %67, %68 : vector<16x32xf32>
    %cst_14 = arith.constant dense<0.000000e+00> : vector<16x32xf32>
    %70 = tpu.matmul %69, %4, %cst_14 {dimension_numbers = #tpu.dot_dimension_numbers<[1], [0], [0], [1], [0, 0, 1, 1], [], []>} : vector<16x32xf32>, vector<32x32xf32>, vector<16x32xf32> -> vector<16x32xf32>
    %71 = vector.broadcast %9 : vector<1x32xf32> to vector<16x32xf32>
    %72 = arith.addf %70, %71 : vector<16x32xf32>
    %73 = arith.negf %72 : vector<16x32xf32>
    %74 = math.exp %73 : vector<16x32xf32>
    %cst_15 = arith.constant 1.000000e+00 : f32
    %75 = vector.broadcast %cst_15 : f32 to vector<16x32xf32>
    %76 = arith.addf %75, %74 : vector<16x32xf32>
    %77 = arith.divf %75, %76 : vector<16x32xf32>
    %78 = arith.mulf %72, %77 : vector<16x32xf32>
    %cst_16 = arith.constant dense<0.000000e+00> : vector<16xf32>
    %79 = vector.multi_reduction <add>, %78, %cst_16 [1] : vector<16x32xf32> to vector<16xf32>
    %80 = vector.shape_cast %79 : vector<16xf32> to vector<16x1xf32>
    %cst_17 = arith.constant 3.200000e+01 : f32
    %81 = vector.broadcast %cst_17 : f32 to vector<16x1xf32>
    %82 = arith.divf %80, %81 : vector<16x1xf32>
    %83 = arith.mulf %78, %78 : vector<16x32xf32>
    %cst_18 = arith.constant dense<0.000000e+00> : vector<16xf32>
    %84 = vector.multi_reduction <add>, %83, %cst_18 [1] : vector<16x32xf32> to vector<16xf32>
    %85 = vector.shape_cast %84 : vector<16xf32> to vector<16x1xf32>
    %cst_19 = arith.constant 3.200000e+01 : f32
    %86 = vector.broadcast %cst_19 : f32 to vector<16x1xf32>
    %87 = arith.divf %85, %86 : vector<16x1xf32>
    %88 = arith.mulf %82, %82 : vector<16x1xf32>
    %89 = arith.subf %87, %88 : vector<16x1xf32>
    %cst_20 = arith.constant 0.000000e+00 : f32
    %90 = vector.broadcast %cst_20 : f32 to vector<16x1xf32>
    %91 = arith.maximumf %89, %90 : vector<16x1xf32>
    %92 = vector.broadcast %82 : vector<16x1xf32> to vector<16x32xf32>
    %93 = arith.subf %78, %92 : vector<16x32xf32>
    %cst_21 = arith.constant 9.99999974E-6 : f32
    %94 = vector.broadcast %cst_21 : f32 to vector<16x1xf32>
    %95 = arith.addf %91, %94 : vector<16x1xf32>
    %96 = math.rsqrt %95 : vector<16x1xf32>
    %97 = vector.broadcast %96 : vector<16x1xf32> to vector<16x32xf32>
    %98 = arith.mulf %93, %97 : vector<16x32xf32>
    %99 = vector.broadcast %10 : vector<1x32xf32> to vector<16x32xf32>
    %100 = arith.mulf %98, %99 : vector<16x32xf32>
    %101 = vector.broadcast %11 : vector<1x32xf32> to vector<16x32xf32>
    %102 = arith.addf %100, %101 : vector<16x32xf32>
    %cst_22 = arith.constant dense<0.000000e+00> : vector<16x128xf32>
    %103 = tpu.matmul %102, %5, %cst_22 {dimension_numbers = #tpu.dot_dimension_numbers<[1], [0], [0], [1], [0, 0, 1, 1], [], []>} : vector<16x32xf32>, vector<32x128xf32>, vector<16x128xf32> -> vector<16x128xf32>
    %104 = vector.broadcast %12 : vector<1x128xf32> to vector<16x128xf32>
    %105 = arith.addf %103, %104 : vector<16x128xf32>
    %c0_23 = arith.constant 0 : index
    %c0_24 = arith.constant 0 : index
    %106 = vector.load %arg3[%c0_23, %c0_24] : memref<16x128xf32, #tpu.memory_space<vmem>>, vector<16x128xf32>
    tpu.vector_store %arg3[%c0_23, %c0_24], %105 {strides = array<i32>} : memref<16x128xf32, #tpu.memory_space<vmem>>, vector<16x128xf32>,
    return
  }
}

</mosaic_0001>

<bundles_post_ra>
// kernel: forward.1
= control target key start
LH: loop header
LB: loop body
LE: loop exit
PB: predicated region body
PF: predicated region fallthrough
CT: control target
= control target key end

     0   :  { %v597_v0 = vmov 0   ;;  %v598_v2 = vmov 1   ;;  %v25_v22 = vlaneseq  ;;  %vm95_vm5 = vcmask 719872   ;;  %s722_s0 = inlined_call_operand.vmem [shape: s32[16,8], index: 0, kind: input, shape index: {}]   ;;  %s723_s1 = inlined_call_operand.vmem [shape: f32[88,32], index: 1, kind: input, shape index: {}]   ;;  %s724_s2 = inlined_call_operand.vmem [shape: f32[72,128], index: 2, kind: input, shape index: {}]   ;;  %s725_s3 = inlined_call_operand.vmem [shape: f32[16,128], index: 3, kind: output, shape index: {}]  }
   0x1   :  { %578 = vset.pattern.permute.xlu0 %v597_v0  ;;  %v14_v1 = vld [vmem:[%s722_s0] sm:$0xff]  ;;  %579 = vset.pattern.permute.xlu1 %v598_v2  ;;  %v15_v3 = vld [vmem:[%s722_s0 + $0x8] sm:$0xff]  ;;  %v86_v7 = vld [vmem:[%s723_s1 + $0x10] sm:$0xff]  ;;  %v599_v33 = vmov 0.0   ;;  %vm177_vm11 = vcmask 261120  }
   0x2   :  { %v84_v4 = vld [vmem:[%s723_s1] sm:$0xff]  ;;  %55 = vperm.xlu0 %578, %v14_v1   ;;  %v68_v5 = vadd.s32 72, %v14_v1  ;;  %v85_v6 = vld [vmem:[%s723_s1 + $0x8] sm:$0xff]  ;;  %v87_v8 = vld [vmem:[%s723_s1 + $0x18] sm:$0xff]  ;;  %v69_v11 = vadd.s32 72, %v15_v3  ;;  %v659_v23 = vshrl.u32 %v25_v22, 7 }
   0x3   :  { %v539_v9 = vpack.c.bf16 %v85_v6, %v84_v4  ;;  %v543_v10 = vpack.c.bf16 %v87_v8, %v86_v7  ;;  %v88_v12 = vld [vmem:[%s723_s1 + $0x20] sm:$0xff]  ;;  %v89_v13 = vld [vmem:[%s723_s1 + $0x28] sm:$0xff]  ;;  %v90_v15 = vld [vmem:[%s723_s1 + $0x30] sm:$0xff]  ;;  %v26_v26 = vand.u32 127, %v25_v22 }
   0x4   :  { %71 = vperm.xlu1 %579, %v68_v5   ;;  %v547_v14 = vpack.c.bf16 %v89_v13, %v88_v12  ;;  %v91_v16 = vld [vmem:[%s723_s1 + $0x38] sm:$0xff]  ;;  %v92_v18 = vld [vmem:[%s723_s1 + $0x40] sm:$0xff]  ;;  %v93_v19 = vld [vmem:[%s723_s1 + $0x48] sm:$0xff]  ;;  %v34_v24 = vand.u32 7, %v659_v23  ;;  %v29_v25 = vadd.s32 8, %v659_v23  ;;  %v219_v5 = vsub.s32 1, %v659_v23 }
   0x5   :  { %540 = vmatprep.subr.bf16.mxu0 %v539_v9  ;;  %v551_v17 = vpack.c.bf16 %v91_v16, %v90_v15  ;;  %v555_v20 = vpack.c.bf16 %v93_v19, %v92_v18  ;;  %v94_v21 = vld [vmem:[%s723_s1 + $0x50] sm:$0xff]  ;;  %v16_v45 = vld [vmem:[%s724_s2] sm:$0xff]  ;;  %v17_v46 = vld [vmem:[%s724_s2 + $0x8] sm:$0xff]  ;;  %v225_v18 = vsub.s32 2, %v659_v23 }
   0x6   :  { %58 = vperm.xlu0 %578, %v15_v3   ;;  %542 = vmatpush3.bf16.msra.mxu0 %v539_v9  ;;  %v62_v27 = vadd.s32 64, %v34_v24  ;;  %v41_v28 = vand.u32 7, %v29_v25  ;;  %v18_v47 = vld [vmem:[%s724_s2 + $0x10] sm:$0xff]  ;;  %v559_v48 = vpack.c.bf16 %v17_v46, %v16_v45  ;;  %v19_v49 = vld [vmem:[%s724_s2 + $0x18] sm:$0xff]  ;;  %v213_v3 = vsub.s32 0, %v659_v23  ;;  %v683_v4 = vld [vmem:[%s724_s2 + $0x40] sm:$0xff] }
   0x7   :  { %544 = vmatprep.subr.bf16.mxu0 %v543_v10  ;;  %v563_v50 = vpack.c.bf16 %v19_v49, %v18_v47  ;;  %v226_v19 = vrot.slane %v683_v4, %v225_v18  ;;  %v23_v45 = vld [vmem:[%s724_s2 + $0x38] sm:$0xff] }
   0x8   :  { %74 = vperm.xlu1 %579, %v69_v11   ;;  %vm64_vm0 = vcmp.eq.s32.totalorder %v26_v26, %v62_v27  ;;  %v63_v29 = vadd.s32 64, %v41_v28  ;;  %560 = vmatprep.subr.bf16.mxu1 %v559_v48  ;;  %v214_v7 = vrot.slane %v683_v4, %v213_v3 }
   0x9   :  { %562 = vmatpush3.bf16.msra.mxu1 %v559_v48 }
   0xa   :  { %546 = vmatpush3.bf16.msra.mxu0 %v543_v10  ;;  %580 = vset.pattern.permute.xlu0 %v598_v2  ;;  %vm65_vm4 = vcmp.eq.s32.totalorder %v26_v26, %v63_v29  ;;  %v220_v10 = vrot.slane %v683_v4, %v219_v5 }
   0xb   :  { %548 = vmatprep.subr.bf16.mxu0 %v547_v14  ;;  %564 = vmatprep.subr.bf16.mxu1 %v563_v50 }
   0xd   :  { %566 = vmatpush3.bf16.msra.mxu1 %v563_v50 }
   0xe   :  { %550 = vmatpush3.bf16.msra.mxu0 %v547_v14 }
   0xf   :  { %552 = vmatprep.subr.bf16.mxu0 %v551_v17 }
  0x12   :  { %554 = vmatpush3.bf16.msra.mxu0 %v551_v17 }
  0x13   :  { %556 = vmatprep.subr.bf16.mxu0 %v555_v20 }
  0x16   :  { %558 = vmatpush3.bf16.msra.mxu0 %v555_v20 }
  0x17   :  { %512 = vmatprep.subr.mxu0 %v94_v21 }
  0x1a   :  { %513 = vmatpush3.msra.mxu0 %v94_v21 }
  0x81   :  { %v56_v30 = vpop.permute.xlu0 %55 }
  0x82   :  { %vm60_vm1 = vcmp.eq.s32.totalorder %v26_v26, %v56_v30 }
  0x83   :  { %vm66_vm2 = vmor %vm60_vm1, %vm64_vm0  ;;  %v72_v31 = vpop.permute.xlu1 %71 }
  0x84   :  { %vm76_vm3 = vcmp.eq.s32.totalorder %v26_v26, %v72_v31 }
  0x85   :  { %v59_v32 = vpop.permute.xlu0 %58  ;;  %vm78_vm6 = vmor %vm66_vm2, %vm76_vm3 }
  0x86   :  { %vm61_vm7 = vcmp.eq.s32.totalorder %v26_v26, %v59_v32  ;;  %v457_v34 = vsel %vm78_vm6, 1.0, %v599_v33 }
  0x87   :  { %vm67_vm8 = vmor %vm61_vm7, %vm65_vm4  ;;  %514 = vmatprep.mubr.msk.f32.mxu0 %vm95_vm5, %v457_v34  ;;  %v75_v35 = vpop.permute.xlu1 %74 }
  0x88   :  { %vm77_vm9 = vcmp.eq.s32.totalorder %v26_v26, %v75_v35 }
  0x89   :  { %vm79_vm10 = vmor %vm67_vm8, %vm77_vm9 }
  0x8a   :  { %v458_v36 = vsel %vm79_vm10, 1.0, %v599_v33 }
  0x8b   :  { %515 = vmatmul.mubr.msk.f32.vlgmr.msra.gmra.mrb[0].mxu0 %vm95_vm5, %v458_v36 }
 0x15e   :  { %v516_v37 = vpop.f32.mrb[0].mxu0 }
 0x15f   :  { %v168_v38 = vpop.f32.mrb[1].mxu0  ;;  %v181_v39 = vsel %vm177_vm11, %v516_v37, 0.0  ;;  %v188_v43 = vmul.f32 %v516_v37, %v516_v37 }
 0x160   :  { %v187_v40 = vmul.f32 %v168_v38, %v168_v38  ;;  %182 = vadd.xlane.f32.xlu1 %v181_v39  ;;  %v178_v41 = vsel %vm177_vm11, %v168_v38, 0.0 }
 0x161   :  { %179 = vadd.xlane.f32.xlu0 %v178_v41  ;;  %v192_v44 = vsel %vm177_vm11, %v188_v43, 0.0  ;;  %v20_v41 = vld [vmem:[%s724_s2 + $0x20] sm:$0xff] }
 0x162   :  { %v189_v42 = vsel %vm177_vm11, %v187_v40, 0.0 }
 0x165   :  { %190 = vadd.xlane.f32.xlu0 %v189_v42  ;;  %v21_v42 = vld [vmem:[%s724_s2 + $0x28] sm:$0xff] }
 0x166   :  { %v567_v43 = vpack.c.bf16 %v21_v42, %v20_v41 }
 0x168   :  { %568 = vmatprep.subr.bf16.mxu1 %v567_v43 }
 0x169   :  { %193 = vadd.xlane.f32.xlu0 %v192_v44  ;;  %v22_v44 = vld [vmem:[%s724_s2 + $0x30] sm:$0xff] }
 0x16a   :  { %v571_v46 = vpack.c.bf16 %v23_v45, %v22_v44 }
 0x1ed   :  { %v183_v53 = vpop.xlane.xlu1 %182 }
 0x1ee   :  { %v180_v51 = vpop.xlane.xlu0 %179  ;;  %v186_v55 = vmul.f32 0.03125, %v183_v53 }
 0x1ef   :  { %v185_v52 = vmul.f32 0.03125, %v180_v51 }
 0x1f0   :  { %v198_v60 = vmul.f32 %v186_v55, %v186_v55  ;;  %v204_v11 = vsub.f32 %v516_v37, %v186_v55 }
 0x1f1   :  { %v197_v56 = vmul.f32 %v185_v52, %v185_v52  ;;  %v203_v6 = vsub.f32 %v168_v38, %v185_v52 }
 0x1f2   :  { %v191_v54 = vpop.xlane.xlu0 %190 }
 0x1f3   :  { %v195_v57 = vmul.f32 0.03125, %v191_v54 }
 0x1f5   :  { %v199_v58 = vsub.f32 %v195_v57, %v197_v56 }
 0x1f6   :  { %v194_v59 = vpop.xlane.xlu0 %193 }
 0x1f7   :  { %v201_v61 = vmax.f32 %v199_v58, 0.0  ;;  %v196_v62 = vmul.f32 0.03125, %v194_v59 }
 0x1f9   :  { %v205_v63 = vadd.f32 1e-05, %v201_v61  ;;  %v200_v0 = vsub.f32 %v196_v62, %v198_v60 }
 0x1fb   :  { %581 = vrsqrt.f32 %v205_v63  ;;  %v202_v1 = vmax.f32 %v200_v0, 0.0  ;;  %v356_v63 = vsub.s32 3, %v659_v23  ;;  %v362_v0 = vsub.s32 4, %v659_v23 }
 0x1fd   :  { %v206_v2 = vadd.f32 1e-05, %v202_v1 }
 0x1ff   :  { %583 = vrsqrt.f32 %v206_v2  ;;  %v357_v2 = vrot.slane %v683_v4, %v356_v63 }
 0x205   :  { %v582_v8 = vpop.eup %581 }
 0x206   :  { %v209_v9 = vmul.f32 %v582_v8, %v203_v6 }
 0x208   :  { %v215_v12 = vmul.f32 %v214_v7, %v209_v9  ;;  %v363_v9 = vrot.slane %v683_v4, %v362_v0 }
 0x209   :  { %v584_v13 = vpop.eup %583 }
 0x20a   :  { %v210_v14 = vmul.f32 %v584_v13, %v204_v11  ;;  %v221_v15 = vadd.f32 %v220_v10, %v215_v12 }
 0x20c   :  { %v216_v16 = vmul.f32 %v214_v7, %v210_v14  ;;  %525 = vmatprep.mubr.msk.f32.mxu1 %vm177_vm11, %v221_v15  ;;  %v368_v14 = vsub.s32 5, %v659_v23 }
 0x20e   :  { %v222_v17 = vadd.f32 %v220_v10, %v216_v16  ;;  %v369_v15 = vrot.slane %v683_v4, %v368_v14 }
 0x210   :  { %526 = vmatmul.mubr.msk.f32.vlgmr.msra.gmra.mrb[0].mxu1 %vm177_vm11, %v222_v17 }
 0x211   :  { %570 = vmatpush3.bf16.msra.mxu1 %v567_v43 }
 0x212   :  { %572 = vmatprep.subr.bf16.mxu1 %v571_v46 }
 0x215   :  { %574 = vmatpush3.bf16.msra.mxu1 %v571_v46 }
 0x2e3   :  { %v527_v20 = vpop.f32.mrb[0].mxu1 }
 0x2e4   :  { %v305_v21 = vadd.f32 %v527_v20, %v226_v19  ;;  %v299_v22 = vpop.f32.mrb[1].mxu1 }
 0x2e5   :  { %v300_v24 = vadd.f32 %v299_v22, %v226_v19 }
 0x2e6   :  { %v464_v25 = vmul.f32 -1.442695, %v305_v21 }
 0x2e7   :  { %v463_v26 = vmul.f32 -1.442695, %v300_v24 }
 0x2e8   :  { %585 = vpow2.f32 %v464_v25 }
 0x2e9   :  { %587 = vpow2.f32 %v463_v26 }
 0x2f2   :  { %v586_v27 = vpop.eup %585 }
 0x2f3   :  { %v588_v28 = vpop.eup %587  ;;  %v315_v29 = vadd.f32 1.0, %v586_v27 }
 0x2f4   :  { %v314_v30 = vadd.f32 1.0, %v588_v28 }
 0x2f5   :  { %589 = vrcp.f32 %v315_v29 }
 0x2f6   :  { %591 = vrcp.f32 %v314_v30 }
 0x2ff   :  { %v590_v31 = vpop.eup %589 }
 0x300   :  { %v592_v32 = vpop.eup %591  ;;  %v321_v33 = vmul.f32 %v590_v31, %v305_v21 }
 0x301   :  { %v320_v34 = vmul.f32 %v592_v32, %v300_v24 }
 0x302   :  { %v325_v35 = vsel %vm177_vm11, %v321_v33, 0.0  ;;  %v331_v36 = vmul.f32 %v321_v33, %v321_v33 }
 0x303   :  { %326 = vadd.xlane.f32.xlu0 %v325_v35  ;;  %v322_v37 = vsel %vm177_vm11, %v320_v34, 0.0  ;;  %v330_v38 = vmul.f32 %v320_v34, %v320_v34 }
 0x304   :  { %323 = vadd.xlane.f32.xlu1 %v322_v37  ;;  %v335_v39 = vsel %vm177_vm11, %v331_v36, 0.0 }
 0x305   :  { %v332_v40 = vsel %vm177_vm11, %v330_v38, 0.0 }
 0x307   :  { %336 = vadd.xlane.f32.xlu0 %v335_v39 }
 0x308   :  { %333 = vadd.xlane.f32.xlu1 %v332_v40 }
 0x390   :  { %v327_v47 = vpop.xlane.xlu0 %326 }
 0x391   :  { %v329_v48 = vmul.f32 0.03125, %v327_v47  ;;  %v324_v49 = vpop.xlane.xlu1 %323 }
 0x392   :  { %v328_v50 = vmul.f32 0.03125, %v324_v49 }
 0x393   :  { %v341_v52 = vmul.f32 %v329_v48, %v329_v48  ;;  %v347_v1 = vsub.f32 %v321_v33, %v329_v48 }
 0x394   :  { %v337_v51 = vpop.xlane.xlu0 %336  ;;  %v340_v55 = vmul.f32 %v328_v50, %v328_v50  ;;  %v346_v5 = vsub.f32 %v320_v34, %v328_v50 }
 0x395   :  { %v339_v53 = vmul.f32 0.03125, %v337_v51  ;;  %v334_v54 = vpop.xlane.xlu1 %333 }
 0x396   :  { %v338_v56 = vmul.f32 0.03125, %v334_v54 }
 0x397   :  { %v343_v57 = vsub.f32 %v339_v53, %v341_v52 }
 0x398   :  { %v342_v58 = vsub.f32 %v338_v56, %v340_v55 }
 0x399   :  { %v345_v59 = vmax.f32 %v343_v57, 0.0 }
 0x39a   :  { %v344_v60 = vmax.f32 %v342_v58, 0.0 }
 0x39b   :  { %v349_v61 = vadd.f32 1e-05, %v345_v59 }
 0x39c   :  { %v348_v62 = vadd.f32 1e-05, %v344_v60 }
 0x39d   :  { %593 = vrsqrt.f32 %v349_v61 }
 0x39e   :  { %595 = vrsqrt.f32 %v348_v62 }
 0x3a7   :  { %v594_v3 = vpop.eup %593 }
 0x3a8   :  { %v596_v6 = vpop.eup %595  ;;  %v353_v7 = vmul.f32 %v594_v3, %v347_v1 }
 0x3a9   :  { %v352_v8 = vmul.f32 %v596_v6, %v346_v5 }
 0x3aa   :  { %v359_v10 = vmul.f32 %v357_v2, %v353_v7 }
 0x3ab   :  { %v358_v11 = vmul.f32 %v357_v2, %v352_v8 }
 0x3ac   :  { %v365_v13 = vadd.f32 %v363_v9, %v359_v10 }
 0x3ad   :  { %v364_v12 = vadd.f32 %v363_v9, %v358_v11 }
 0x3af   :  { %536 = vmatprep.mubr.msk.f32.mxu1 %vm177_vm11, %v364_v12 }
 0x3b0   :  { %537 = vmatmul.mubr.msk.f32.vlgmr.msra.gmra.mrb[2].mxu1 %vm177_vm11, %v365_v13 }
 0x483   :  { %v538_v16 = vpop.f32.mrb[2].mxu1 }
 0x484   :  { %v448_v17 = vadd.f32 %v538_v16, %v369_v15  ;;  %v442_v18 = vpop.f32.mrb[3].mxu1 }
 0x485   :  { %v443_v19 = vadd.f32 %v442_v18, %v369_v15 }
 0x486   :  { %452 = vst [vmem:[%s725_s3 + $0x8] sm:$0xff] %v448_v17 }
 0x487   :  { %451 = vst [vmem:[%s725_s3] sm:$0xff] %v443_v19 }

</bundles_post_ra>
